<compile_context>
chip_gen: v7x
topology: tpu7x:2x2x1
jax: 0.10.0
libtpu: 0.0.40
codegen_flags: <defaults>
</compile_context>

<pallas_src>
import random

import jax
import jax.numpy as jnp
from jax.experimental import pallas as pl
from jax.experimental.pallas import tpu as pltpu

_SMALL_FALLBACK_ELEMS = 64 * 1024  # below this, fused XLA clip beats a kernel launch


def _brightness_kernel(factor_ref, x_ref, o_ref):
    # factor_ref: (1,) f32 scalar in SMEM; x_ref/o_ref: (tb, lanes) VMEM tile.
    f = factor_ref[0]
    x = x_ref[...].astype(jnp.float32)
    o_ref[...] = jnp.clip(x * f, 0.0, 1.0).astype(o_ref.dtype)


def _target_block_bytes() -> int:
    """Per-generation byte budget for one input block (conservative, no vmem override)."""
    try:
        kind = jax.devices()[0].device_kind.lower()
    except Exception:
        kind = ""
    if any(tag in kind for tag in ("v6", "v7", "7x")):
        # v6e/v7x: 4 MiB f32 blocks -> in+out, double-buffered = 16 MiB resident,
        # fits the 32 MiB scoped-VMEM default; amortizes ~0.35 us/step overhead
        # against v7x's 3.2 TB/s HBM.
        return 4 << 20
    # v5e & older: scoped-VMEM default is only 16 MiB -> keep blocks at 2 MiB.
    return 2 << 20


def _pick_layout(total: int, itemsize: int):
    """Choose a lane-dense (m, lanes) slab and row-tile tb; avoid padding when possible."""
    for lanes in (512, 256, 128):
        if total % lanes == 0:
            padded_total = total
            break
    else:
        lanes = 128
        padded_total = ((total + lanes - 1) // lanes) * lanes
    m = padded_total // lanes

    if m <= 8:
        # Block equals the full array dims (allowed even if m % 8 != 0).
        tb = m
    else:
        rows = max(8, (_target_block_bytes() // (lanes * itemsize)) // 8 * 8)
        # Keep >= 2 grid steps so the "parallel" grid axis can shard across
        # both TensorCores on v7x (a 1-step grid idles half the chip).
        half = max(8, (m // 2) // 8 * 8)
        tb = min(rows, half)
    return lanes, padded_total, m, tb


def _random_brightness_pallas(img: jax.Array, factor: jax.Array) -> jax.Array:
    orig_shape = img.shape
    orig_dtype = img.dtype
    total = img.size
    itemsize = jnp.dtype(orig_dtype).itemsize

    lanes, padded_total, m, tb = _pick_layout(total, itemsize)

    flat = img.reshape(-1)
    if padded_total != total:
        # Rare path: img.size not a multiple of 128. Pad (and slice off below).
        flat = jnp.pad(flat, (0, padded_total - total))
    x2d = flat.reshape(m, lanes)

    factor_arr = jnp.asarray(factor, dtype=jnp.float32).reshape(1)

    out2d = pl.pallas_call(
        _brightness_kernel,
        out_shape=jax.ShapeDtypeStruct((m, lanes), orig_dtype),
        grid=(pl.cdiv(m, tb),),
        in_specs=[
            # scalar brightness factor, kept in SMEM (untiled)
            pl.BlockSpec(memory_space=pltpu.SMEM),
            # lane-dense tiles of the flattened image (partial last block allowed)
            pl.BlockSpec((tb, lanes), lambda i: (i, 0)),
        ],
        out_specs=pl.BlockSpec((tb, lanes), lambda i: (i, 0)),
        compiler_params=pltpu.CompilerParams(
            dimension_semantics=("parallel",),
        ),
    )(factor_arr, x2d)

    out_flat = out2d.reshape(-1)
    if padded_total != total:
        out_flat = out_flat[:total]
    return out_flat.reshape(orig_shape)


# Jitted entry points (shapes are static; factor is a traced device scalar).
_random_brightness_pallas_jit = jax.jit(_random_brightness_pallas)


@jax.jit
def random_brightness(img: jax.Array, factor: jax.Array) -> jax.Array:
    """clip(img * factor, 0, 1); Pallas kernel for large images, fused XLA for tiny ones."""
    factor = jnp.asarray(factor, dtype=jnp.float32)
    if img.size < _SMALL_FALLBACK_ELEMS:
        return jnp.clip(img.astype(jnp.float32) * factor, 0.0, 1.0).astype(img.dtype)
    return _random_brightness_pallas(img, factor)


class RandomBrightness:
    """JAX/Pallas equivalent of the PyTorch RandomBrightness module (float images in [0,1])."""

    def __init__(self, brightness=(0.2, 1.2)):
        self.brightness = (max(0, brightness[0]), brightness[1])

    def __call__(self, img: jax.Array) -> jax.Array:
        # Host-side randomness, same as the torch version's random.uniform.
        # Passed as a device array so the jitted wrapper never retraces per draw.
        factor = jnp.float32(random.uniform(*self.brightness))
        return random_brightness(img, factor)


if __name__ == "__main__":
    # Deterministic inputs / randomness.
    random.seed(0)
    key = jax.random.PRNGKey(0)

    N, C, H, W = 2, 4, 16, 16
    img = jax.random.uniform(key, (N, C, H, W), dtype=jnp.float32)  # values in [0, 1)

    module = RandomBrightness((0.2, 1.2))
    factor = random.uniform(*module.brightness)  # draw once so we can verify vs reference
    factor_arr = jnp.float32(factor)

    # Run the Pallas kernel path explicitly (the public wrapper would take the
    # small-input fast path at this size) and verify against a plain-JAX reference.
    out = _random_brightness_pallas_jit(img, factor_arr)
    out = jax.block_until_ready(out)

    ref = jnp.clip(img * factor, 0.0, 1.0)
    assert out.shape == img.shape and out.dtype == img.dtype
    assert jnp.allclose(out, ref, atol=1e-6), "pallas kernel mismatch vs reference"

    # Also exercise the public module path once (fast path at this size).
    out2 = jax.block_until_ready(module(img))
    assert out2.shape == img.shape and out2.dtype == img.dtype

    print("KERNEL_OK")
</pallas_src>

<mosaic_0001>
module attributes {stable_mosaic.version = 11 : i64} {
  func.func @_brightness_kernel(%arg0: i32, %arg1: memref<1xf32, #tpu.memory_space<smem>>, %arg2: memref<4x512xf32, #tpu.memory_space<vmem>>, %arg3: memref<4x512xf32, #tpu.memory_space<vmem>>) attributes {dimension_semantics = [#tpu.dimension_semantics<parallel>], iteration_bounds = array<i64: 1>, scalar_prefetch = 0 : i64, scratch_operands = 0 : i64, tpu.core_type = #tpu.core_type<tc>, window_params = [{transform_indices = @transform_0, window_bounds = array<i64: 1>}, {transform_indices = @transform_1, window_bounds = array<i64: 4, 512>}, {transform_indices = @transform_2, window_bounds = array<i64: 4, 512>}]} {
    %c0 = arith.constant 0 : index
    %0 = memref.load %arg1[%c0] : memref<1xf32, #tpu.memory_space<smem>>
    %c0_0 = arith.constant 0 : index
    %c0_1 = arith.constant 0 : index
    %1 = vector.load %arg2[%c0_0, %c0_1] : memref<4x512xf32, #tpu.memory_space<vmem>>, vector<4x512xf32>
    %2 = vector.broadcast %0 : f32 to vector<4x512xf32>
    %3 = arith.mulf %1, %2 : vector<4x512xf32>
    %cst = arith.constant 0.000000e+00 : f32
    %cst_2 = arith.constant 1.000000e+00 : f32
    %4 = vector.broadcast %cst : f32 to vector<4x512xf32>
    %5 = arith.maximumf %4, %3 : vector<4x512xf32>
    %6 = vector.broadcast %cst_2 : f32 to vector<4x512xf32>
    %7 = arith.minimumf %6, %5 : vector<4x512xf32>
    %c0_3 = arith.constant 0 : index
    %c0_4 = arith.constant 0 : index
    %8 = vector.load %arg3[%c0_3, %c0_4] : memref<4x512xf32, #tpu.memory_space<vmem>>, vector<4x512xf32>
    tpu.vector_store %arg3[%c0_3, %c0_4], %7 {strides = array<i32>} : memref<4x512xf32, #tpu.memory_space<vmem>>, vector<4x512xf32>,
    return
  }
  func.func @transform_0(%arg0: i32) -> i32 {
    %c0_i32 = arith.constant 0 : i32
    %c0_i32_0 = arith.constant 0 : i32
    return %c0_i32 : i32
  }
  func.func @transform_1(%arg0: i32) -> (i32, i32) {
    %c0_i32 = arith.constant 0 : i32
    %c0_i32_0 = arith.constant 0 : i32
    return %arg0, %c0_i32 : i32, i32
  }
  func.func @transform_2(%arg0: i32) -> (i32, i32) {
    %c0_i32 = arith.constant 0 : i32
    %c0_i32_0 = arith.constant 0 : i32
    return %arg0, %c0_i32 : i32, i32
  }
}

</mosaic_0001>

<bundles_post_ra>
// kernel: _random_brightness_pallas.1
= control target key start
LH: loop header
LB: loop body
LE: loop exit
PB: predicated region body
PF: predicated region fallthrough
CT: control target
= control target key end

     0   :  { %s58_s0 = inlined_call_operand.<no memory space> [shape: f32[1], index: 0, kind: input, shape index: {}]   ;;  %s59_s1 = inlined_call_operand.vmem [shape: f32[4,512], index: 1, kind: input, shape index: {}]   ;;  %s60_s2 = inlined_call_operand.vmem [shape: f32[4,512], index: 2, kind: output, shape index: {}]  }
   0x1   :  { %v13_v0 = vld [vmem:[%s59_s1] sm:$0xff]  ;;  %v15_v1 = vstv %s58_s0  ;;  %v14_v2 = vld [vmem:[%s59_s1 + $0x8] sm:$0xff] }
   0x2   :  { %v16_v3 = vmul.f32 %v15_v1, %v13_v0  ;;  %v17_v4 = vmul.f32 %v15_v1, %v14_v2 }
   0x4   :  { %v18_v5 = vmax.f32 %v16_v3, 0.0  ;;  %v19_v6 = vmax.f32 %v17_v4, 0.0 }
   0x6   :  { %v20_v7 = vmin.f32 %v18_v5, 1.0  ;;  %v21_v8 = vmin.f32 %v19_v6, 1.0 }
   0x8   :  { %22 = vst [vmem:[%s60_s2] sm:$0xff] %v20_v7  ;;  %23 = vst [vmem:[%s60_s2 + $0x8] sm:$0xff] %v21_v8 }

</bundles_post_ra>
